<compile_context>
chip_gen: v7x
topology: tpu7x:2x2x1
jax: 0.10.0
libtpu: 0.0.40
codegen_flags: <defaults>
</compile_context>

<pallas_src>
import functools

import jax
import jax.numpy as jnp
from jax.experimental import pallas as pl
from jax.experimental.pallas import tpu as pltpu

_IN_FEATS = 16 * 49     # 784 flattened conv inputs
_CONV_OUT = 30          # 15 out-channels * 2 positions
_N_CLASSES = 10
_OUT_PAD = 128          # lane-dense output slab width
_NEG_BIG = -1e30        # padding bias -> exp underflows to exactly 0
_SAFE_LOGIT_BOUND = 60.0  # static-shift log_softmax is exact & safe below this


def _model_kernel(x_ref, wc_ref, w2_ref, w4_ref, b4_ref, o_ref, *,
                  bf16_eup, runtime_max):
    # x_ref : (TB, 784)  f32   flattened conv-input tile (cast to bf16 here)
    # wc_ref: (784, 30)  bf16  conv-as-matmul weight (VMEM resident)
    # w2_ref: (30, 30)   f32   f2.weight.T
    # w4_ref: (30, 128)  f32   f4.weight.T zero-padded to 128 lanes
    # b4_ref: (1, 128)   f32   f4.bias, padded columns = -1e30
    # o_ref : (TB, 128)  bf16  log-softmax; valid classes in cols [:10]

    # f0 (Conv1d as matmul): bf16 operands, f32 MXU accumulation.
    x = x_ref[...].astype(jnp.bfloat16)
    acc0 = jnp.dot(x, wc_ref[...], preferred_element_type=jnp.float32)

    # f1 (tanh) + f2 (Linear, no bias).
    if bf16_eup:                       # v6e/v7x: bf16 EUP, bf16 MXU operands
        h = jnp.tanh(acc0.astype(jnp.bfloat16))
        w2 = w2_ref[...].astype(jnp.bfloat16)
    else:                              # v5e: no bf16 VPU/EUP -> stay f32
        h = jnp.tanh(acc0)
        w2 = w2_ref[...]
    acc1 = jnp.dot(h, w2, preferred_element_type=jnp.float32)

    # f3 (tanh) + f4 (Linear + bias) on the 128-wide padded slab.
    if bf16_eup:
        h2 = jnp.tanh(acc1.astype(jnp.bfloat16))
        w4 = w4_ref[...].astype(jnp.bfloat16)
    else:
        h2 = jnp.tanh(acc1)
        w4 = w4_ref[...]
    logits = jnp.dot(h2, w4, preferred_element_type=jnp.float32) + b4_ref[...]

    # f5 (LogSoftmax over dim=1).  Padded cols hold ~-1e30 -> exp() == 0.
    if runtime_max:
        m = jnp.max(logits, axis=-1, keepdims=True)
        shifted = logits - m
    else:
        # |logit| is statically bounded well inside f32 exp range -> no
        # cross-lane max reduce needed (mathematically identical result).
        m = None
        shifted = logits
    if bf16_eup:
        e = jnp.exp(shifted.astype(jnp.bfloat16)).astype(jnp.float32)
    else:
        e = jnp.exp(shifted)
    lse = jnp.log(jnp.sum(e, axis=-1, keepdims=True))
    if m is not None:
        lse = lse + m
    o_ref[...] = (logits - lse).astype(o_ref.dtype)


def prepare_params(w_conv, w2, w4, b4):
    """One-time parameter prep (keep OUT of the per-call hot path).

    w_conv: (15, 16, 48)  Conv1d.weight
    w2    : (30, 30)      f2.weight
    w4    : (10, 30)      f4.weight
    b4    : (10,)         f4.bias
    """
    # Scatter conv weights into a dense (784, 30) matmul weight:
    #   out[b, o, t] = sum_{c,k} x[b, c, t+k] * w_conv[o, c, k],  t in {0, 1}
    #   flattened-in row  = c*49 + t + k
    #   flattened-out col = o*2 + t          (matches torch .view(B, 30))
    Wbig = jnp.zeros((_IN_FEATS, _CONV_OUT), dtype=jnp.float32)
    w_cko = jnp.transpose(w_conv, (1, 2, 0)).reshape(16 * 48, 15)  # (c*k, o)
    for t in range(2):
        rows = (jnp.arange(16)[:, None] * 49 + t
                + jnp.arange(48)[None, :]).reshape(-1)
        cols = jnp.arange(15) * 2 + t
        Wbig = Wbig.at[rows[:, None], cols[None, :]].set(w_cko)
    Wbig = Wbig.astype(jnp.bfloat16)

    w2_t = w2.T.astype(jnp.float32)                                   # (30, 30)
    w4_pad = (jnp.zeros((_CONV_OUT, _OUT_PAD), jnp.float32)
              .at[:, :_N_CLASSES].set(w4.T.astype(jnp.float32)))      # (30, 128)
    b4_pad = (jnp.full((1, _OUT_PAD), _NEG_BIG, jnp.float32)
              .at[0, :_N_CLASSES].set(b4.astype(jnp.float32)))        # (1, 128)

    # |tanh| <= 1  =>  |logit_j| <= ||w4[j,:]||_1 + |b4_j|.  If this bound is
    # small, the kernel can skip the runtime max-subtraction in log_softmax.
    logit_bound = float(jnp.max(jnp.sum(jnp.abs(w4), axis=1) + jnp.abs(b4)))
    return Wbig, w2_t, w4_pad, b4_pad, logit_bound


def _default_bf16_eup():
    """bf16 EUP/VPU exists on v6e and later; v5e and older have no bf16 path."""
    try:
        kind = jax.devices()[0].device_kind.lower()
    except Exception:
        return False
    return not any(v in kind for v in ("v2", "v3", "v4", "v5"))


def conv1d_then_linear_47(x, params, *, tile_b=1024, bf16_eup=None):
    """x: (B, 16, 49) (or (B, 784)) f32.  params: output of prepare_params.
    Returns (B, 10) f32 log-probabilities."""
    Wbig, w2_t, w4_pad, b4_pad, logit_bound = params
    if bf16_eup is None:
        bf16_eup = _default_bf16_eup()
    runtime_max = logit_bound > _SAFE_LOGIT_BOUND

    B = x.shape[0]
    x2 = x.reshape(B, _IN_FEATS)          # free view; stays f32 in HBM
    # Only pad the batch up to the 8-row sublane granule (tiny), never to tile.
    B8 = max(8, ((B + 7) // 8) * 8)
    if B8 != B:
        x2 = jnp.pad(x2, ((0, B8 - B), (0, 0)))

    # Batch tile: as big as allowed (HBM roofline), but capped near ceil(B/2)
    # so v7x's two TensorCores both get grid steps (free on 1-TC chips).
    # Multiple of 16 keeps bf16 output blocks aligned to the packed tile.
    half = max(16, ((-(-B8 // 2)) + 15) // 16 * 16)
    tb = max(8, min(tile_b, half, B8))
    n_tiles = pl.cdiv(B8, tb)

    kernel = functools.partial(_model_kernel,
                               bf16_eup=bf16_eup, runtime_max=runtime_max)
    out = pl.pallas_call(
        kernel,
        out_shape=jax.ShapeDtypeStruct((B8, _OUT_PAD), jnp.bfloat16),
        grid_spec=pl.GridSpec(
            grid=(n_tiles,),
            in_specs=[
                # x: batch-tiled, double-buffered by the auto pipeline.
                pl.BlockSpec((tb, _IN_FEATS), lambda i: (i, 0)),
                # Weights: same block every step -> effectively VMEM-resident.
                pl.BlockSpec((_IN_FEATS, _CONV_OUT), lambda i: (0, 0)),
                pl.BlockSpec((_CONV_OUT, _CONV_OUT), lambda i: (0, 0)),
                pl.BlockSpec((_CONV_OUT, _OUT_PAD), lambda i: (0, 0)),
                pl.BlockSpec((1, _OUT_PAD), lambda i: (0, 0)),
            ],
            out_specs=pl.BlockSpec((tb, _OUT_PAD), lambda i: (i, 0)),
        ),
        compiler_params=pltpu.CompilerParams(
            dimension_semantics=("parallel",),
            vmem_limit_bytes=32 * 1024 * 1024),
    )(x2, Wbig, w2_t, w4_pad, b4_pad)

    return out[:B, :_N_CLASSES].astype(jnp.float32)


def _reference(x, w_conv, w2, w4, b4):
    """Pure-JAX f32 reference matching the PyTorch forward exactly."""
    B = x.shape[0]
    xv = x.reshape(B, 16, 49)
    y = jnp.stack(
        [jnp.einsum('bck,ock->bo', xv[:, :, t:t + 48], w_conv) for t in range(2)],
        axis=-1,
    )  # (B, 15, 2)
    y = jnp.tanh(y).reshape(B, 30)
    y = jnp.tanh(y @ w2.T)
    logits = y @ w4.T + b4
    return jax.nn.log_softmax(logits, axis=1)


if __name__ == "__main__":
    key = jax.random.PRNGKey(0)
    k_x, k_c, k_2, k_4, k_b = jax.random.split(key, 5)

    # Deterministic synthetic parameters (PyTorch shapes)
    w_conv = jax.random.normal(k_c, (15, 16, 48), dtype=jnp.float32) * 0.05
    w2 = jax.random.normal(k_2, (30, 30), dtype=jnp.float32) * 0.1
    w4 = jax.random.normal(k_4, (10, 30), dtype=jnp.float32) * 0.1
    b4 = jax.random.normal(k_b, (10,), dtype=jnp.float32) * 0.1
    params = prepare_params(w_conv, w2, w4, b4)   # one-time, outside hot path

    # Small batch (B=2): single tile, pads only to the 8-row sublane granule.
    B = 2
    x = jax.random.normal(k_x, (B, 16, 49), dtype=jnp.float32)
    out = jax.block_until_ready(conv1d_then_linear_47(x, params))
    ref = _reference(x, w_conv, w2, w4, b4)
    assert out.shape == (B, 10)
    assert jnp.allclose(out, ref, atol=5e-2, rtol=2e-2), "mismatch vs reference (B=2)"

    # Medium batch (B=40): exercises multi-tile grid + masked ragged last block.
    B2 = 40
    x2 = jax.random.normal(k_x, (B2, 16, 49), dtype=jnp.float32)
    out2 = jax.block_until_ready(conv1d_then_linear_47(x2, params))
    ref2 = _reference(x2, w_conv, w2, w4, b4)
    assert out2.shape == (B2, 10)
    assert jnp.allclose(out2, ref2, atol=5e-2, rtol=2e-2), "mismatch vs reference (B=40)"

    print("KERNEL_OK")
</pallas_src>

<mosaic_0001>
module attributes {stable_mosaic.version = 11 : i64} {
  func.func @_model_kernel(%arg0: i32, %arg1: memref<8x784xf32, #tpu.memory_space<vmem>>, %arg2: memref<784x30xbf16, #tpu.memory_space<vmem>>, %arg3: memref<30x30xf32, #tpu.memory_space<vmem>>, %arg4: memref<30x128xf32, #tpu.memory_space<vmem>>, %arg5: memref<1x128xf32, #tpu.memory_space<vmem>>, %arg6: memref<8x128xbf16, #tpu.memory_space<vmem>>) attributes {dimension_semantics = [#tpu.dimension_semantics<parallel>], iteration_bounds = array<i64: 1>, scalar_prefetch = 0 : i64, scratch_operands = 0 : i64, tpu.core_type = #tpu.core_type<tc>, window_params = [{transform_indices = @transform_0, window_bounds = array<i64: 8, 784>}, {pipeline_mode = #tpu.pipeline_mode<synchronous>, transform_indices = @transform_1, window_bounds = array<i64: 784, 30>}, {pipeline_mode = #tpu.pipeline_mode<synchronous>, transform_indices = @transform_2, window_bounds = array<i64: 30, 30>}, {pipeline_mode = #tpu.pipeline_mode<synchronous>, transform_indices = @transform_3, window_bounds = array<i64: 30, 128>}, {pipeline_mode = #tpu.pipeline_mode<synchronous>, transform_indices = @transform_4, window_bounds = array<i64: 1, 128>}, {transform_indices = @transform_5, window_bounds = array<i64: 8, 128>}]} {
    %c0 = arith.constant 0 : index
    %c0_0 = arith.constant 0 : index
    %0 = vector.load %arg1[%c0, %c0_0] : memref<8x784xf32, #tpu.memory_space<vmem>>, vector<8x784xf32>
    %1 = arith.truncf %0 : vector<8x784xf32> to vector<8x784xbf16>
    %c0_1 = arith.constant 0 : index
    %c0_2 = arith.constant 0 : index
    %2 = vector.load %arg2[%c0_1, %c0_2] : memref<784x30xbf16, #tpu.memory_space<vmem>>, vector<784x30xbf16>
    %cst = arith.constant dense<0.000000e+00> : vector<8x30xf32>
    %3 = tpu.matmul %1, %2, %cst {dimension_numbers = #tpu.dot_dimension_numbers<[1], [0], [0], [1], [0, 0, 1, 1], [], []>} : vector<8x784xbf16>, vector<784x30xbf16>, vector<8x30xf32> -> vector<8x30xf32>
    %4 = arith.truncf %3 : vector<8x30xf32> to vector<8x30xbf16>
    %5 = math.tanh %4 : vector<8x30xbf16>
    %c0_3 = arith.constant 0 : index
    %c0_4 = arith.constant 0 : index
    %6 = vector.load %arg3[%c0_3, %c0_4] : memref<30x30xf32, #tpu.memory_space<vmem>>, vector<30x30xf32>
    %7 = arith.truncf %6 : vector<30x30xf32> to vector<30x30xbf16>
    %cst_5 = arith.constant dense<0.000000e+00> : vector<8x30xf32>
    %8 = tpu.matmul %5, %7, %cst_5 {dimension_numbers = #tpu.dot_dimension_numbers<[1], [0], [0], [1], [0, 0, 1, 1], [], []>} : vector<8x30xbf16>, vector<30x30xbf16>, vector<8x30xf32> -> vector<8x30xf32>
    %9 = arith.truncf %8 : vector<8x30xf32> to vector<8x30xbf16>
    %10 = math.tanh %9 : vector<8x30xbf16>
    %c0_6 = arith.constant 0 : index
    %c0_7 = arith.constant 0 : index
    %11 = vector.load %arg4[%c0_6, %c0_7] : memref<30x128xf32, #tpu.memory_space<vmem>>, vector<30x128xf32>
    %12 = arith.truncf %11 : vector<30x128xf32> to vector<30x128xbf16>
    %cst_8 = arith.constant dense<0.000000e+00> : vector<8x128xf32>
    %13 = tpu.matmul %10, %12, %cst_8 {dimension_numbers = #tpu.dot_dimension_numbers<[1], [0], [0], [1], [0, 0, 1, 1], [], []>} : vector<8x30xbf16>, vector<30x128xbf16>, vector<8x128xf32> -> vector<8x128xf32>
    %c0_9 = arith.constant 0 : index
    %c0_10 = arith.constant 0 : index
    %14 = vector.load %arg5[%c0_9, %c0_10] : memref<1x128xf32, #tpu.memory_space<vmem>>, vector<1x128xf32>
    %15 = vector.broadcast %14 : vector<1x128xf32> to vector<8x128xf32>
    %16 = arith.addf %13, %15 : vector<8x128xf32>
    %17 = arith.truncf %16 : vector<8x128xf32> to vector<8x128xbf16>
    %18 = math.exp %17 : vector<8x128xbf16>
    %19 = arith.extf %18 : vector<8x128xbf16> to vector<8x128xf32>
    %cst_11 = arith.constant dense<0.000000e+00> : vector<8xf32>
    %20 = vector.multi_reduction <add>, %19, %cst_11 [1] : vector<8x128xf32> to vector<8xf32>
    %21 = vector.shape_cast %20 : vector<8xf32> to vector<8x1xf32>
    %22 = math.log %21 : vector<8x1xf32>
    %23 = vector.broadcast %22 : vector<8x1xf32> to vector<8x128xf32>
    %24 = arith.subf %16, %23 : vector<8x128xf32>
    %25 = arith.truncf %24 : vector<8x128xf32> to vector<8x128xbf16>
    %c0_12 = arith.constant 0 : index
    %c0_13 = arith.constant 0 : index
    %26 = vector.load %arg6[%c0_12, %c0_13] : memref<8x128xbf16, #tpu.memory_space<vmem>>, vector<8x128xbf16>
    tpu.vector_store %arg6[%c0_12, %c0_13], %25 {strides = array<i32>} : memref<8x128xbf16, #tpu.memory_space<vmem>>, vector<8x128xbf16>,
    return
  }
  func.func @transform_0(%arg0: i32) -> (i32, i32) {
    %c0_i32 = arith.constant 0 : i32
    %c0_i32_0 = arith.constant 0 : i32
    return %arg0, %c0_i32 : i32, i32
  }
  func.func @transform_1(%arg0: i32) -> (i32, i32) {
    %c0_i32 = arith.constant 0 : i32
    %c0_i32_0 = arith.constant 0 : i32
    %c0_i32_1 = arith.constant 0 : i32
    return %c0_i32, %c0_i32_0 : i32, i32
  }
  func.func @transform_2(%arg0: i32) -> (i32, i32) {
    %c0_i32 = arith.constant 0 : i32
    %c0_i32_0 = arith.constant 0 : i32
    %c0_i32_1 = arith.constant 0 : i32
    return %c0_i32, %c0_i32_0 : i32, i32
  }
  func.func @transform_3(%arg0: i32) -> (i32, i32) {
    %c0_i32 = arith.constant 0 : i32
    %c0_i32_0 = arith.constant 0 : i32
    %c0_i32_1 = arith.constant 0 : i32
    return %c0_i32, %c0_i32_0 : i32, i32
  }
  func.func @transform_4(%arg0: i32) -> (i32, i32) {
    %c0_i32 = arith.constant 0 : i32
    %c0_i32_0 = arith.constant 0 : i32
    %c0_i32_1 = arith.constant 0 : i32
    return %c0_i32, %c0_i32_0 : i32, i32
  }
  func.func @transform_5(%arg0: i32) -> (i32, i32) {
    %c0_i32 = arith.constant 0 : i32
    %c0_i32_0 = arith.constant 0 : i32
    return %arg0, %c0_i32 : i32, i32
  }
}

</mosaic_0001>

<bundles_post_ra>
// kernel: tpu_custom_call.1
= control target key start
LH: loop header
LB: loop body
LE: loop exit
PB: predicated region body
PF: predicated region fallthrough
CT: control target
= control target key end

     0   :  { %v968_v41 = vmov 0.0   ;;  %vm969_vm0 = vmmov 0   ;;  %s1223_s0 = inlined_call_operand.vmem [shape: f32[8,784], index: 0, kind: input, shape index: {}]   ;;  %s1224_s1 = inlined_call_operand.vmem [shape: bf16[784,30], index: 1, kind: input, shape index: {}]   ;;  %s1225_s2 = inlined_call_operand.vmem [shape: f32[30,30], index: 2, kind: input, shape index: {}]   ;;  %s1226_s3 = inlined_call_operand.vmem [shape: f32[30,128], index: 3, kind: input, shape index: {}]   ;;  %s1227_s4 = inlined_call_operand.vmem [shape: f32[1,128], index: 4, kind: input, shape index: {}]   ;;  %s1228_s5 = inlined_call_operand.hbm [shape: bf16[8,128], index: 5, kind: output, shape index: {}]  }
   0x1   :  { %v887_v0 = vld [vmem:[%s1224_s1 + $0x40] sm:$0xff]   ;;  %v891_v4 = vld [vmem:[%s1224_s1 + $0x48] sm:$0xff]   ;;  %v895_v8 = vld [vmem:[%s1224_s1 + $0x50] sm:$0xff]  }
   0x2   :  { %v888_v1 = vld [vmem:[%s1224_s1 + $0xc0] sm:$0xff]   ;;  %788 = vmatprep.subr.bf16.mxu0 %v887_v0  ;;  %v892_v5 = vld [vmem:[%s1224_s1 + $0xc8] sm:$0xff]   ;;  %v896_v9 = vld [vmem:[%s1224_s1 + $0xd0] sm:$0xff]  }
   0x3   :  { %v889_v2 = vld [vmem:[%s1224_s1] sm:$0xff]   ;;  %810 = vmatprep.subr.bf16.mxu1 %v888_v1  ;;  %v893_v6 = vld [vmem:[%s1224_s1 + $0x8] sm:$0xff]   ;;  %v897_v10 = vld [vmem:[%s1224_s1 + $0x10] sm:$0xff]  }
   0x4   :  { %v890_v3 = vld [vmem:[%s1224_s1 + $0x80] sm:$0xff]   ;;  %789 = vmatpush3.bf16.msra.mxu0 %v889_v2  ;;  %v894_v7 = vld [vmem:[%s1224_s1 + $0x88] sm:$0xff]   ;;  %v898_v11 = vld [vmem:[%s1224_s1 + $0x90] sm:$0xff]  }
   0x5   :  { %811 = vmatpush3.bf16.msra.mxu1 %v890_v3  ;;  %790 = vmatprep.subr.bf16.mxu0 %v891_v4  ;;  %v899_v12 = vld [vmem:[%s1224_s1 + $0x58] sm:$0xff]   ;;  %v903_v16 = vld [vmem:[%s1224_s1 + $0x60] sm:$0xff]   ;;  %v907_v20 = vld [vmem:[%s1224_s1 + $0x68] sm:$0xff]  }
   0x6   :  { %812 = vmatprep.subr.bf16.mxu1 %v892_v5  ;;  %v900_v13 = vld [vmem:[%s1224_s1 + $0xd8] sm:$0xff]   ;;  %v904_v17 = vld [vmem:[%s1224_s1 + $0xe0] sm:$0xff]   ;;  %v908_v21 = vld [vmem:[%s1224_s1 + $0xe8] sm:$0xff]  }
   0x7   :  { %v901_v14 = vld [vmem:[%s1224_s1 + $0x18] sm:$0xff]   ;;  %v905_v18 = vld [vmem:[%s1224_s1 + $0x20] sm:$0xff]   ;;  %v909_v22 = vld [vmem:[%s1224_s1 + $0x28] sm:$0xff]  }
   0x8   :  { %791 = vmatpush3.bf16.msra.mxu0 %v893_v6  ;;  %v902_v15 = vld [vmem:[%s1224_s1 + $0x98] sm:$0xff]   ;;  %v906_v19 = vld [vmem:[%s1224_s1 + $0xa0] sm:$0xff]   ;;  %v910_v23 = vld [vmem:[%s1224_s1 + $0xa8] sm:$0xff]  }
   0x9   :  { %813 = vmatpush3.bf16.msra.mxu1 %v894_v7  ;;  %792 = vmatprep.subr.bf16.mxu0 %v895_v8  ;;  %v911_v24 = vld [vmem:[%s1224_s1 + $0x70] sm:$0xff]   ;;  %v915_v28 = vld [vmem:[%s1224_s1 + $0x78] sm:$0xff]   ;;  %v23_v32 = vld [vmem:[%s1223_s0 + $0x8] sm:$0xff] }
   0xa   :  { %814 = vmatprep.subr.bf16.mxu1 %v896_v9  ;;  %v912_v25 = vld [vmem:[%s1224_s1 + $0xf0] sm:$0xff]   ;;  %v916_v29 = vld [vmem:[%s1224_s1 + $0xf8] sm:$0xff]   ;;  %v22_v34 = vld [vmem:[%s1223_s0] sm:$0xff]  ;;  %v30_v35 = vpack.c.bf16 %v23_v32, %v23_v32 }
   0xb   :  { %v913_v26 = vld [vmem:[%s1224_s1 + $0x30] sm:$0xff]   ;;  %v917_v30 = vld [vmem:[%s1224_s1 + $0x38] sm:$0xff]   ;;  %v29_v37 = vpack.c.bf16 %v22_v34, %v22_v34  ;;  %v919_v40 = vld [vmem:[%s1224_s1 + $0x140] sm:$0xff]  }
   0xc   :  { %793 = vmatpush3.bf16.msra.mxu0 %v897_v10  ;;  %v914_v27 = vld [vmem:[%s1224_s1 + $0xb0] sm:$0xff]   ;;  %v918_v31 = vld [vmem:[%s1224_s1 + $0xb8] sm:$0xff]   ;;  %464 = vmatprep.mubr.bf16.mxu0 %v30_v35  ;;  %v920_v42 = vld [vmem:[%s1224_s1 + $0x100] sm:$0xff]  }
   0xd   :  { %815 = vmatpush3.bf16.msra.mxu1 %v898_v11  ;;  %794 = vmatprep.subr.bf16.mxu0 %v899_v12  ;;  %v25_v33 = vld [vmem:[%s1223_s0 + $0x18] sm:$0xff]  ;;  %v24_v38 = vld [vmem:[%s1223_s0 + $0x10] sm:$0xff]  ;;  %v921_v43 = vld [vmem:[%s1224_s1 + $0x148] sm:$0xff]  }
   0xe   :  { %816 = vmatprep.subr.bf16.mxu1 %v900_v13  ;;  %v32_v36 = vpack.c.bf16 %v25_v33, %v25_v33  ;;  %v31_v39 = vpack.c.bf16 %v24_v38, %v24_v38  ;;  %v922_v44 = vld [vmem:[%s1224_s1 + $0x108] sm:$0xff]   ;;  %v923_v45 = vld [vmem:[%s1224_s1 + $0x150] sm:$0xff]   ;;  %v925_v47 = vld [vmem:[%s1224_s1 + $0x158] sm:$0xff]  }
   0xf   :  { %v924_v46 = vld [vmem:[%s1224_s1 + $0x110] sm:$0xff]   ;;  %v926_v48 = vld [vmem:[%s1224_s1 + $0x118] sm:$0xff]   ;;  %v927_v49 = vld [vmem:[%s1224_s1 + $0x160] sm:$0xff]  }
  0x10   :  { %795 = vmatpush3.bf16.msra.mxu0 %v901_v14  ;;  %504 = vmatprep.mubr.bf16.mxu1 %v32_v36  ;;  %v928_v50 = vld [vmem:[%s1224_s1 + $0x120] sm:$0xff]   ;;  %v27_v52 = vld [vmem:[%s1223_s0 + $0x28] sm:$0xff]  ;;  %v28_v55 = vld [vmem:[%s1223_s0 + $0x30] sm:$0xff] }
  0x11   :  { %817 = vmatpush3.bf16.msra.mxu1 %v902_v15  ;;  %796 = vmatprep.subr.bf16.mxu0 %v903_v16  ;;  %v935_v51 = vld [vmem:[%s1224_s1 + $0x180] sm:$0xff]   ;;  %v929_v53 = vld [vmem:[%s1224_s1 + $0x168] sm:$0xff]   ;;  %v34_v54 = vpack.c.bf16 %v27_v52, %v27_v52 }
  0x12   :  { %818 = vmatprep.subr.bf16.mxu1 %v904_v17 }
  0x14   :  { %797 = vmatpush3.bf16.msra.mxu0 %v905_v18 }
  0x15   :  { %819 = vmatpush3.bf16.msra.mxu1 %v906_v19  ;;  %798 = vmatprep.subr.bf16.mxu0 %v907_v20 }
  0x16   :  { %820 = vmatprep.subr.bf16.mxu1 %v908_v21 }
  0x18   :  { %799 = vmatpush3.bf16.msra.mxu0 %v909_v22 }
  0x19   :  { %821 = vmatpush3.bf16.msra.mxu1 %v910_v23  ;;  %800 = vmatprep.subr.bf16.mxu0 %v911_v24 }
  0x1a   :  { %822 = vmatprep.subr.bf16.mxu1 %v912_v25 }
  0x1c   :  { %801 = vmatpush3.bf16.msra.mxu0 %v913_v26 }
  0x1d   :  { %823 = vmatpush3.bf16.msra.mxu1 %v914_v27  ;;  %802 = vmatprep.subr.bf16.mxu0 %v915_v28 }
  0x1e   :  { %824 = vmatprep.subr.bf16.mxu1 %v916_v29 }
  0x20   :  { %803 = vmatpush3.bf16.msra.mxu0 %v917_v30 }
  0x21   :  { %825 = vmatpush3.bf16.msra.mxu1 %v918_v31  ;;  %832 = vmatprep.subr.bf16.mxu0 %v919_v40 }
  0x22   :  { %862 = vmatprep.subr.bf16.mxu1 %v968_v41 }
  0x23   :  { %465 = vmatmul.mubr.bf16.vlgmr.msra.gmra.mrb[0].mxu0 %v29_v37 }
  0x24   :  { %505 = vmatmul.mubr.bf16.vlgmr.msra.gmra.mrb[0].mxu1 %v31_v39  ;;  %833 = vmatpush3.bf16.msra.mxu0 %v920_v42 }
  0x25   :  { %864 = vmatprep.mubr.msk.bf16.mxu1 %vm969_vm0, %v968_v41  ;;  %834 = vmatprep.subr.bf16.mxu0 %v921_v43 }
  0x28   :  { %835 = vmatpush3.bf16.msra.mxu0 %v922_v44 }
  0x29   :  { %836 = vmatprep.subr.bf16.mxu0 %v923_v45 }
  0x2c   :  { %837 = vmatpush3.bf16.msra.mxu0 %v924_v46 }
  0x2d   :  { %838 = vmatprep.subr.bf16.mxu0 %v925_v47 }
  0x30   :  { %839 = vmatpush3.bf16.msra.mxu0 %v926_v48 }
  0x31   :  { %840 = vmatprep.subr.bf16.mxu0 %v927_v49 }
  0x32   :  { %10 = vsyncpa [#allocation3], 0  ;;  %863 = vmatpush3.bf16.msra.mxu1 %v935_v51  ;;  %v35_v56 = vpack.c.bf16 %v28_v55, %v28_v55  ;;  %vm428_vm1 = vcmask 130048   ;;  %544 = vmatprep.mubr.bf16.mxu0 %v34_v54  ;;  %v930_v57 = vld [vmem:[%s1224_s1 + $0x128] sm:$0xff]   ;;  %v931_v58 = vld [vmem:[%s1224_s1 + $0x170] sm:$0xff]   ;;  %vm604_vm2 = vcmask 1046528  }
  0x33   :  { %868 = vmatprep.subr.bf16.mxu1 %v968_v41  ;;  %v932_v59 = vld [vmem:[%s1224_s1 + $0x130] sm:$0xff]   ;;  %v933_v60 = vld [vmem:[%s1224_s1 + $0x178] sm:$0xff]   ;;  %v26_v62 = vld [vmem:[%s1223_s0 + $0x20] sm:$0xff]  ;;  %vm600_vm3 = vcmask 244736  }
  0x34   :  { %841 = vmatpush3.bf16.msra.mxu0 %v928_v50  ;;  %v934_v61 = vld [vmem:[%s1224_s1 + $0x138] sm:$0xff]   ;;  %v33_v63 = vpack.c.bf16 %v26_v62, %v26_v62  ;;  %v594_v0 = vld [vmem:[%s1225_s2] sm:$0xff]  ;;  %v595_v1 = vld [vmem:[%s1225_s2 + $0x8] sm:$0xff] }
  0x35   :  { %842 = vmatprep.subr.bf16.mxu0 %v929_v53  ;;  %865 = vmatmul.mubr.msk.bf16.vlgmr.msra.gmra.mrb[4].mxu1 %vm428_vm1, %v35_v56  ;;  %v596_v2 = vld [vmem:[%s1225_s2 + $0x10] sm:$0xff]  ;;  %v598_v3 = vpack.c.bf16 %v595_v1, %v594_v0  ;;  %v597_v4 = vld [vmem:[%s1225_s2 + $0x18] sm:$0x3f]  ;;  %v650_v31 = vld [vmem:[%s1226_s3] sm:$0xff] }
  0x36   :  { %872 = vmatprep.mubr.msk.bf16.mxu1 %vm969_vm0, %v968_v41  ;;  %v599_v5 = vpack.c.bf16 %v597_v4, %v596_v2  ;;  %v651_v32 = vld [vmem:[%s1226_s3 + $0x8] sm:$0xff]  ;;  %v652_v33 = vld [vmem:[%s1226_s3 + $0x10] sm:$0xff]  ;;  %v653_v35 = vld [vmem:[%s1226_s3 + $0x18] sm:$0x3f]  ;;  %s970_s3 = smov [#allocation2]  }
  0x37   :  { %869 = vmatpush3.bf16.msra.mxu1 %v598_v3  ;;  %v654_v34 = vpack.c.bf16 %v651_v32, %v650_v31  ;;  %v655_v36 = vpack.c.bf16 %v653_v35, %v652_v33  ;;  %v786_v45 = vld [vmem:[%s1227_s4] ss:$0 sm:$0xff]  ;;  %s727_s20 = sshll.u32 %s970_s3, 4  ;;  %s728_s20 = int_to_ptr.vmem [resolvable:$true] %s727_s20 }
  0x38   :  { %843 = vmatpush3.bf16.msra.mxu0 %v930_v57  ;;  %870 = vmatprep.subr.bf16.mxu1 %v968_v41  ;;  %v606_v6 = vsel %vm604_vm2, %v599_v5, 0  ;;  %s944_s4 = scalar_lea.vmem %s728_s20, 64  ;;  %p949_p1 = scmp.lt.s32.totalorder %s728_s20, %s728_s20 }
  0x39   :  { %844 = vmatprep.subr.bf16.mxu0 %v931_v58  ;;  %v667_v37 = vsel %vm604_vm2, %v655_v36, 0  ;;  %p945_p0 = scmp.ne.s32.totalorder %s728_s20, %s944_s4  ;;  %p950_p2 = scmp.lt.s32.totalorder %s944_s4, %s944_s4 }
  0x3b   :  { %871 = vmatpush3.bf16.msra.mxu1 %v606_v6  ;;  %p951_p3 = por %p950_p2, %p949_p1 }
  0x3c   :  { %845 = vmatpush3.bf16.msra.mxu0 %v932_v59  ;;  %876 = vmatprep.subr.bf16.mxu1 %v968_v41 }
  0x3d   :  { %846 = vmatprep.subr.bf16.mxu0 %v933_v60  ;;  %p952_p4 = pnand %p951_p3, %p945_p0 }
  0x40   :  { %847 = vmatpush3.bf16.msra.mxu0 %v934_v61 }
  0x43   :  { %545 = vmatmul.mubr.bf16.vlgmr.msra.gmra.mrb[4].mxu0 %v33_v63 }
  0xf6   :  { %v804_v7 = vpop.f32.mrb[0].mxu0 }
  0xf7   :  { %v826_v8 = vpop.f32.mrb[0].mxu1  ;;  %v805_v9 = vpop.f32.mrb[1].mxu0 }
  0xf8   :  { %v827_v10 = vpop.f32.mrb[1].mxu1  ;;  %v806_v11 = vadd.f32 %v805_v9, %v804_v7  ;;  %v807_v13 = vpop.f32.mrb[2].mxu0 }
  0xf9   :  { %v828_v12 = vadd.f32 %v827_v10, %v826_v8  ;;  %v829_v14 = vpop.f32.mrb[2].mxu1  ;;  %v808_v15 = vpop.f32.mrb[3].mxu0 }
  0xfa   :  { %v830_v16 = vpop.f32.mrb[3].mxu1 }
  0xfb   :  { %v507_v17 = vadd.f32 %v828_v12, %v806_v11 }
 0x108   :  { %v586_v18 = vpop.f32.mrb[4].mxu1 }
 0x109   :  { %v866_v19 = vpop.f32.mrb[5].mxu1 }
 0x10a   :  { %v589_v20 = vpop.f32.mrb[6].mxu1 }
 0x10b   :  { %v867_v21 = vpop.f32.mrb[7].mxu1 }
 0x116   :  { %v848_v22 = vpop.f32.mrb[4].mxu0 }
 0x117   :  { %v849_v23 = vpop.f32.mrb[5].mxu0 }
 0x118   :  { %v850_v24 = vadd.f32 %v849_v23, %v848_v22  ;;  %v851_v25 = vpop.f32.mrb[6].mxu0 }
 0x119   :  { %v852_v26 = vpop.f32.mrb[7].mxu0 }
 0x11a   :  { %v547_v27 = vadd.f32 %v850_v24, %v507_v17 }
 0x11c   :  { %v587_v28 = vadd.f32 %v586_v18, %v547_v27 }
 0x11e   :  { %v592_v29 = vpack.c.bf16 %v587_v28, %v587_v28 }
 0x120   :  { %936 = vtanh.bf16 %v592_v29 }
 0x12b   :  { %v937_v30 = vpop.eup %936 }
 0x12c   :  { %873 = vmatmul.mubr.msk.bf16.vlgmr.msra.gmra.mrb[8].mxu1 %vm600_vm3, %v937_v30 }
 0x12d   :  { %880 = vmatprep.mubr.msk.bf16.mxu1 %vm969_vm0, %v968_v41  ;;  %877 = vmatpush3.bf16.msra.mxu1 %v654_v34 }
 0x12e   :  { %878 = vmatprep.subr.bf16.mxu1 %v968_v41 }
 0x131   :  { %879 = vmatpush3.bf16.msra.mxu1 %v667_v37 }
 0x1ff   :  { %v642_v38 = vpop.f32.mrb[8].mxu1 }
 0x200   :  { %v648_v39 = vpack.c.bf16 %v642_v38, %v642_v38  ;;  %v874_v40 = vpop.f32.mrb[9].mxu1 }
 0x201   :  { %v645_v42 = vpop.f32.mrb[10].mxu1 }
 0x202   :  { %938 = vtanh.bf16 %v648_v39  ;;  %v875_v43 = vpop.f32.mrb[11].mxu1 }
 0x20d   :  { %v939_v44 = vpop.eup %938 }
 0x20e   :  { %881 = vmatmul.mubr.msk.bf16.vlgmr.msra.gmra.mrb[12].mxu1 %vm600_vm3, %v939_v44 }
 0x2e1   :  { %v703_v46 = vpop.f32.mrb[12].mxu1 }
 0x2e2   :  { %v704_v47 = vadd.f32 %v786_v45, %v703_v46  ;;  %v882_v48 = vpop.f32.mrb[13].mxu1 }
 0x2e3   :  { %v706_v41 = vpop.f32.mrb[14].mxu1 }
 0x2e4   :  { %v709_v49 = vpack.c.bf16 %v704_v47, %v704_v47  ;;  %v883_v50 = vpop.f32.mrb[15].mxu1 }
 0x2e6   :  { %v711_v51 = vmul.bf16 1069105081, %v709_v49 }
 0x2e8   :  { %940 = vpow.bf16 %v711_v51 }
 0x2f3   :  { %v941_v52 = vpop.eup %940 }
 0x2f4   :  { %v713_v53 = vunpack.c.l.bf16 %v941_v52 }
 0x2f6   :  { %714 = vadd.xlane.f32.xlu0 %v713_v53 }
 0x383   :  { %v715_v54 = vpop.xlane.xlu0 %714 }
 0x384   :  { %942 = vlog2.f32 %v715_v54 }
 0x38e   :  { %v943_v55 = vpop.eup %942 }
 0x38f   :  { %v717_v56 = vmul.f32 0.6931472, %v943_v55 }
 0x391   :  { %v718_v57 = vsub.f32 %v704_v47, %v717_v56 }
 0x393   :  { %v719_v58 = vpack.c.bf16 %v718_v57, %v718_v57 }
 0x395   :  { %720 = vst [vmem:[#allocation2] sm:$0xf] %v719_v58 }
 0x396   :  { %955 = shalt.err (!%p952_p4)
}
 0x397   :  { %s956_s23 = scalar_lea.hbm %s1228_s5, 64 }
 0x398   :  { %p957_p5 = scmp.ne.s32.totalorder %s1228_s5, %s956_s23  ;;  %p960_p6 = scmp.lt.u32.totalorder %s956_s23, %s1228_s5 }
 0x39a   :  { %p962_p7 = pnand %p960_p6, %p957_p5 }
 0x39c   :  { %965 = shalt.err (!%p962_p7)
}
 0x39d   :  { %730 = dma.vmem_to_hbm [thread:$0]  %s728_s20, 64, %s1228_s5, [#allocation3]  }
 0x39e   :  { %966 = dma.done.wait [#allocation3], 64  }
 0x39f   :  { %967 = vsyncadd [#allocation3], 4294967232 }
 0x3a0   :  { %734 = vsyncpa [#allocation3], 1 }

</bundles_post_ra>
